<compile_context>
chip_gen: v7x
topology: tpu7x:2x2x1
jax: 0.10.0
libtpu: 0.0.40
codegen_flags: <defaults>
</compile_context>

<pallas_src>
import functools
import math

import jax
import jax.numpy as jnp
import numpy as np
from jax import lax
from jax.experimental import pallas as pl
from jax.experimental.pallas import tpu as pltpu


def _mha_kernel(num_heads, q_ref, k_ref, v_ref,
                wq_ref, wk_ref, wv_ref, wo_ref,
                out_ref, *maybe_attn_ref):
    """One grid step == one batch element, all heads fused.

    q_ref/k_ref/v_ref : (1, S, D) VMEM tiles
    w*_ref            : (D, D) VMEM, PyTorch nn.Linear (out, in) layout
    out_ref           : (1, S, D)
    attn_ref (opt.)   : (1, H, S, S)
    """
    attn_ref = maybe_attn_ref[0] if maybe_attn_ref else None
    H = num_heads

    x_q = q_ref[0]                     # (S, D)
    x_k = k_ref[0]                     # (S, D)
    x_v = v_ref[0]                     # (S, D)
    S, D = x_q.shape
    dk = D // H
    scale = 1.0 / math.sqrt(float(dk))

    # y = x @ W.T without an explicit transpose: contract dim 1 of x with dim 1 of W.
    dn = (((1,), (1,)), ((), ()))
    q = lax.dot_general(x_q, wq_ref[...], dn, preferred_element_type=jnp.float32)  # (S, D)
    k = lax.dot_general(x_k, wk_ref[...], dn, preferred_element_type=jnp.float32)  # (S, D)
    v = lax.dot_general(x_v, wv_ref[...], dn, preferred_element_type=jnp.float32)  # (S, D)

    # Fold 1/sqrt(d_k) into Q (O(S*D) multiply instead of O(H*S*S) on scores).
    q = q * scale

    # Split heads in-register: (S, D) -> (H, S, dk).
    qh = q.reshape(S, H, dk).transpose(1, 0, 2)
    kh = k.reshape(S, H, dk).transpose(1, 0, 2)
    vh = v.reshape(S, H, dk).transpose(1, 0, 2)

    # Batched per-head scores, contracting dk directly (no K transpose).
    scores = jnp.einsum("hqd,hkd->hqk", qh, kh,
                        preferred_element_type=jnp.float32)        # (H, S, S)

    # Numerically stable softmax over the key axis.
    m = jnp.max(scores, axis=-1, keepdims=True)
    e = jnp.exp(scores - m)
    denom = jnp.sum(e, axis=-1, keepdims=True)
    # Exact reciprocal kept (approx=True would move the divide to the EUP but
    # loosens the 1e-4 parity tolerance against the torch reference).
    p = e * pl.reciprocal(denom, approx=False)                      # (H, S, S)

    if attn_ref is not None:
        attn_ref[0] = p.astype(attn_ref.dtype)   # single (H, S, S) slab store

    ao = jnp.einsum("hqk,hkd->hqd", p, vh,
                    preferred_element_type=jnp.float32)             # (H, S, dk)
    ao = ao.transpose(1, 0, 2).reshape(S, D)                        # concat heads

    out_ref[0] = lax.dot_general(ao, wo_ref[...], dn,
                                 preferred_element_type=jnp.float32
                                 ).astype(out_ref.dtype)


def multi_head_attention(query, key, value, w_q, w_k, w_v, w_o, num_heads,
                         *, return_attn=True):
    """Pallas MHA forward.

    query/key/value: (B, S, D) float32
    w_q/w_k/w_v/w_o: (D, D) float32, PyTorch nn.Linear convention (out, in),
                     i.e. y = x @ W.T (passed to the kernel unmodified).
    Returns (output (B, S, D), attention_weights (B, H, S, S) or None).
    """
    B, S, D = query.shape
    H = num_heads
    assert D % H == 0

    in_specs = [
        pl.BlockSpec((1, S, D), lambda b: (b, 0, 0)),   # query
        pl.BlockSpec((1, S, D), lambda b: (b, 0, 0)),   # key
        pl.BlockSpec((1, S, D), lambda b: (b, 0, 0)),   # value
        pl.BlockSpec((D, D), lambda b: (0, 0)),         # W_q (full, resident)
        pl.BlockSpec((D, D), lambda b: (0, 0)),         # W_k
        pl.BlockSpec((D, D), lambda b: (0, 0)),         # W_v
        pl.BlockSpec((D, D), lambda b: (0, 0)),         # W_o
    ]

    out_spec_o = pl.BlockSpec((1, S, D), lambda b: (b, 0, 0))
    out_shape_o = jax.ShapeDtypeStruct((B, S, D), query.dtype)

    if return_attn:
        out_specs = [out_spec_o,
                     pl.BlockSpec((1, H, S, S), lambda b: (b, 0, 0, 0))]
        out_shape = (out_shape_o,
                     jax.ShapeDtypeStruct((B, H, S, S), jnp.float32))
    else:
        out_specs = out_spec_o
        out_shape = out_shape_o

    fn = pl.pallas_call(
        functools.partial(_mha_kernel, H),
        out_shape=out_shape,
        grid_spec=pltpu.PrefetchScalarGridSpec(
            num_scalar_prefetch=0,
            grid=(B,),
            in_specs=in_specs,
            out_specs=out_specs,
        ),
        compiler_params=pltpu.CompilerParams(
            dimension_semantics=("parallel",),
        ),
    )
    res = fn(query, key, value, w_q, w_k, w_v, w_o)

    if return_attn:
        return res[0], res[1]
    return res, None


def _reference_mha(query, key, value, w_q, w_k, w_v, w_o, num_heads):
    """Plain-JAX reference mirroring the PyTorch forward (eval mode)."""
    B, S, D = query.shape
    H = num_heads
    dk = D // H
    Q = (query @ w_q.T).reshape(B, S, H, dk).transpose(0, 2, 1, 3)
    K = (key @ w_k.T).reshape(B, -1, H, dk).transpose(0, 2, 1, 3)
    V = (value @ w_v.T).reshape(B, -1, H, dk).transpose(0, 2, 1, 3)
    scores = jnp.einsum("bhqd,bhkd->bhqk", Q, K) / math.sqrt(dk)
    attn = jax.nn.softmax(scores, axis=-1)
    out = jnp.einsum("bhqk,bhkd->bhqd", attn, V)
    out = out.transpose(0, 2, 1, 3).reshape(B, S, D)
    out = out @ w_o.T
    return out, attn


if __name__ == "__main__":
    B, S, D, H = 2, 8, 32, 4

    key0 = jax.random.PRNGKey(0)
    k_q, k_k, k_v, k_wq, k_wk, k_wv, k_wo = jax.random.split(key0, 7)

    query = jax.random.normal(k_q, (B, S, D), dtype=jnp.float32)
    key_in = jax.random.normal(k_k, (B, S, D), dtype=jnp.float32)
    value = jax.random.normal(k_v, (B, S, D), dtype=jnp.float32)

    # nn.Linear(d_model, d_model, bias=False) weights: shape (out, in).
    scale = 1.0 / math.sqrt(D)
    w_q = jax.random.uniform(k_wq, (D, D), jnp.float32, -scale, scale)
    w_k = jax.random.uniform(k_wk, (D, D), jnp.float32, -scale, scale)
    w_v = jax.random.uniform(k_wv, (D, D), jnp.float32, -scale, scale)
    w_o = jax.random.uniform(k_wo, (D, D), jnp.float32, -scale, scale)

    out, attn = multi_head_attention(query, key_in, value, w_q, w_k, w_v, w_o, H)
    jax.block_until_ready((out, attn))

    ref_out, ref_attn = _reference_mha(query, key_in, value, w_q, w_k, w_v, w_o, H)
    np.testing.assert_allclose(np.asarray(out), np.asarray(ref_out), rtol=1e-4, atol=1e-4)
    np.testing.assert_allclose(np.asarray(attn), np.asarray(ref_attn), rtol=1e-4, atol=1e-4)

    # Exercise the attn-skipping fast path (no (B,H,S,S) HBM writeback).
    out_only, none_attn = multi_head_attention(
        query, key_in, value, w_q, w_k, w_v, w_o, H, return_attn=False)
    jax.block_until_ready(out_only)
    assert none_attn is None
    np.testing.assert_allclose(np.asarray(out_only), np.asarray(ref_out),
                               rtol=1e-4, atol=1e-4)

    print("KERNEL_OK")
</pallas_src>

<mosaic_0001>
module attributes {stable_mosaic.version = 11 : i64} {
  func.func @_mha_kernel(%arg0: i32, %arg1: memref<1x8x32xf32, #tpu.memory_space<vmem>>, %arg2: memref<1x8x32xf32, #tpu.memory_space<vmem>>, %arg3: memref<1x8x32xf32, #tpu.memory_space<vmem>>, %arg4: memref<32x32xf32, #tpu.memory_space<vmem>>, %arg5: memref<32x32xf32, #tpu.memory_space<vmem>>, %arg6: memref<32x32xf32, #tpu.memory_space<vmem>>, %arg7: memref<32x32xf32, #tpu.memory_space<vmem>>, %arg8: memref<1x8x32xf32, #tpu.memory_space<vmem>>, %arg9: memref<1x4x8x8xf32, #tpu.memory_space<vmem>>) attributes {dimension_semantics = [#tpu.dimension_semantics<parallel>], iteration_bounds = array<i64: 2>, scalar_prefetch = 0 : i64, scratch_operands = 0 : i64, tpu.core_type = #tpu.core_type<tc>, window_params = [{transform_indices = @transform_0, window_bounds = array<i64: 1, 8, 32>}, {transform_indices = @transform_1, window_bounds = array<i64: 1, 8, 32>}, {transform_indices = @transform_2, window_bounds = array<i64: 1, 8, 32>}, {pipeline_mode = #tpu.pipeline_mode<synchronous>, transform_indices = @transform_3, window_bounds = array<i64: 32, 32>}, {pipeline_mode = #tpu.pipeline_mode<synchronous>, transform_indices = @transform_4, window_bounds = array<i64: 32, 32>}, {pipeline_mode = #tpu.pipeline_mode<synchronous>, transform_indices = @transform_5, window_bounds = array<i64: 32, 32>}, {pipeline_mode = #tpu.pipeline_mode<synchronous>, transform_indices = @transform_6, window_bounds = array<i64: 32, 32>}, {transform_indices = @transform_7, window_bounds = array<i64: 1, 8, 32>}, {transform_indices = @transform_8, window_bounds = array<i64: 1, 4, 8, 8>}]} {
    %c0 = arith.constant 0 : index
    %c0_0 = arith.constant 0 : index
    %c0_1 = arith.constant 0 : index
    %0 = vector.load %arg1[%c0, %c0_0, %c0_1] : memref<1x8x32xf32, #tpu.memory_space<vmem>>, vector<1x8x32xf32>
    %1 = vector.shape_cast %0 : vector<1x8x32xf32> to vector<8x32xf32>
    %c0_2 = arith.constant 0 : index
    %c0_3 = arith.constant 0 : index
    %c0_4 = arith.constant 0 : index
    %2 = vector.load %arg2[%c0_2, %c0_3, %c0_4] : memref<1x8x32xf32, #tpu.memory_space<vmem>>, vector<1x8x32xf32>
    %3 = vector.shape_cast %2 : vector<1x8x32xf32> to vector<8x32xf32>
    %c0_5 = arith.constant 0 : index
    %c0_6 = arith.constant 0 : index
    %c0_7 = arith.constant 0 : index
    %4 = vector.load %arg3[%c0_5, %c0_6, %c0_7] : memref<1x8x32xf32, #tpu.memory_space<vmem>>, vector<1x8x32xf32>
    %5 = vector.shape_cast %4 : vector<1x8x32xf32> to vector<8x32xf32>
    %c0_8 = arith.constant 0 : index
    %c0_9 = arith.constant 0 : index
    %6 = vector.load %arg4[%c0_8, %c0_9] : memref<32x32xf32, #tpu.memory_space<vmem>>, vector<32x32xf32>
    %cst = arith.constant dense<0.000000e+00> : vector<8x32xf32>
    %7 = tpu.matmul %1, %6, %cst {dimension_numbers = #tpu.dot_dimension_numbers<[1], [1], [0], [0], [0, 0, 1, 0], [], []>} : vector<8x32xf32>, vector<32x32xf32>, vector<8x32xf32> -> vector<8x32xf32>
    %c0_10 = arith.constant 0 : index
    %c0_11 = arith.constant 0 : index
    %8 = vector.load %arg5[%c0_10, %c0_11] : memref<32x32xf32, #tpu.memory_space<vmem>>, vector<32x32xf32>
    %cst_12 = arith.constant dense<0.000000e+00> : vector<8x32xf32>
    %9 = tpu.matmul %3, %8, %cst_12 {dimension_numbers = #tpu.dot_dimension_numbers<[1], [1], [0], [0], [0, 0, 1, 0], [], []>} : vector<8x32xf32>, vector<32x32xf32>, vector<8x32xf32> -> vector<8x32xf32>
    %c0_13 = arith.constant 0 : index
    %c0_14 = arith.constant 0 : index
    %10 = vector.load %arg6[%c0_13, %c0_14] : memref<32x32xf32, #tpu.memory_space<vmem>>, vector<32x32xf32>
    %cst_15 = arith.constant dense<0.000000e+00> : vector<8x32xf32>
    %11 = tpu.matmul %5, %10, %cst_15 {dimension_numbers = #tpu.dot_dimension_numbers<[1], [1], [0], [0], [0, 0, 1, 0], [], []>} : vector<8x32xf32>, vector<32x32xf32>, vector<8x32xf32> -> vector<8x32xf32>
    %cst_16 = arith.constant 0.353553385 : f32
    %12 = vector.broadcast %cst_16 : f32 to vector<8x32xf32>
    %13 = arith.mulf %7, %12 : vector<8x32xf32>
    %14 = vector.shape_cast %13 : vector<8x32xf32> to vector<8x4x8xf32>
    %15 = tpu.transpose %14, [1, 0, 2] : vector<8x4x8xf32> -> vector<4x8x8xf32>
    %16 = vector.shape_cast %9 : vector<8x32xf32> to vector<8x4x8xf32>
    %17 = tpu.transpose %16, [1, 0, 2] : vector<8x4x8xf32> -> vector<4x8x8xf32>
    %18 = vector.shape_cast %11 : vector<8x32xf32> to vector<8x4x8xf32>
    %19 = tpu.transpose %18, [1, 0, 2] : vector<8x4x8xf32> -> vector<4x8x8xf32>
    "tpu.trace_start"() <{level = 10 : i32, message = "hqd,hkd->hqk"}> : () -> ()
    %cst_17 = arith.constant dense<0.000000e+00> : vector<4x8x8xf32>
    %20 = tpu.matmul %15, %17, %cst_17 {dimension_numbers = #tpu.dot_dimension_numbers<[2], [2], [1], [1], [0, 0, 0, 1, 1, 1], [0], [0]>} : vector<4x8x8xf32>, vector<4x8x8xf32>, vector<4x8x8xf32> -> vector<4x8x8xf32>
    "tpu.trace_stop"() : () -> ()
    %cst_18 = arith.constant dense<0xFF800000> : vector<4x8xf32>
    %21 = vector.multi_reduction <maximumf>, %20, %cst_18 [2] : vector<4x8x8xf32> to vector<4x8xf32>
    %22 = vector.shape_cast %21 : vector<4x8xf32> to vector<4x8x1xf32>
    %23 = vector.broadcast %22 : vector<4x8x1xf32> to vector<4x8x8xf32>
    %24 = arith.subf %20, %23 : vector<4x8x8xf32>
    %25 = math.exp %24 : vector<4x8x8xf32>
    %cst_19 = arith.constant dense<0.000000e+00> : vector<4x8xf32>
    %26 = vector.multi_reduction <add>, %25, %cst_19 [2] : vector<4x8x8xf32> to vector<4x8xf32>
    %27 = vector.shape_cast %26 : vector<4x8xf32> to vector<4x8x1xf32>
    %28 = tpu.reciprocal %27 : vector<4x8x1xf32> -> vector<4x8x1xf32>
    %29 = vector.broadcast %28 : vector<4x8x1xf32> to vector<4x8x8xf32>
    %30 = arith.mulf %25, %29 : vector<4x8x8xf32>
    %c0_20 = arith.constant 0 : index
    %c0_21 = arith.constant 0 : index
    %c0_22 = arith.constant 0 : index
    %c0_23 = arith.constant 0 : index
    %31 = vector.load %arg9[%c0_20, %c0_21, %c0_22, %c0_23] : memref<1x4x8x8xf32, #tpu.memory_space<vmem>>, vector<1x4x8x8xf32>
    %32 = vector.shape_cast %31 : vector<1x4x8x8xf32> to vector<4x8x8xf32>
    %33 = vector.shape_cast %30 : vector<4x8x8xf32> to vector<1x4x8x8xf32>
    tpu.vector_store %arg9[%c0_20, %c0_21, %c0_22, %c0_23], %33 {strides = array<i32>} : memref<1x4x8x8xf32, #tpu.memory_space<vmem>>, vector<1x4x8x8xf32>,
    "tpu.trace_start"() <{level = 10 : i32, message = "hqk,hkd->hqd"}> : () -> ()
    %cst_24 = arith.constant dense<0.000000e+00> : vector<4x8x8xf32>
    %34 = tpu.matmul %30, %19, %cst_24 {dimension_numbers = #tpu.dot_dimension_numbers<[2], [1], [1], [2], [0, 0, 0, 1, 1, 2], [0], [0]>} : vector<4x8x8xf32>, vector<4x8x8xf32>, vector<4x8x8xf32> -> vector<4x8x8xf32>
    "tpu.trace_stop"() : () -> ()
    %35 = tpu.transpose %34, [1, 0, 2] : vector<4x8x8xf32> -> vector<8x4x8xf32>
    %36 = vector.shape_cast %35 : vector<8x4x8xf32> to vector<8x32xf32>
    %c0_25 = arith.constant 0 : index
    %c0_26 = arith.constant 0 : index
    %37 = vector.load %arg7[%c0_25, %c0_26] : memref<32x32xf32, #tpu.memory_space<vmem>>, vector<32x32xf32>
    %cst_27 = arith.constant dense<0.000000e+00> : vector<8x32xf32>
    %38 = tpu.matmul %36, %37, %cst_27 {dimension_numbers = #tpu.dot_dimension_numbers<[1], [1], [0], [0], [0, 0, 1, 0], [], []>} : vector<8x32xf32>, vector<32x32xf32>, vector<8x32xf32> -> vector<8x32xf32>
    %c0_28 = arith.constant 0 : index
    %c0_29 = arith.constant 0 : index
    %c0_30 = arith.constant 0 : index
    %39 = vector.load %arg8[%c0_28, %c0_29, %c0_30] : memref<1x8x32xf32, #tpu.memory_space<vmem>>, vector<1x8x32xf32>
    %40 = vector.shape_cast %39 : vector<1x8x32xf32> to vector<8x32xf32>
    %41 = vector.shape_cast %38 : vector<8x32xf32> to vector<1x8x32xf32>
    tpu.vector_store %arg8[%c0_28, %c0_29, %c0_30], %41 {strides = array<i32>} : memref<1x8x32xf32, #tpu.memory_space<vmem>>, vector<1x8x32xf32>,
    return
  }
  func.func @transform_0(%arg0: i32) -> (i32, i32, i32) {
    %c0_i32 = arith.constant 0 : i32
    %c0_i32_0 = arith.constant 0 : i32
    %c0_i32_1 = arith.constant 0 : i32
    return %arg0, %c0_i32, %c0_i32_0 : i32, i32, i32
  }
  func.func @transform_1(%arg0: i32) -> (i32, i32, i32) {
    %c0_i32 = arith.constant 0 : i32
    %c0_i32_0 = arith.constant 0 : i32
    %c0_i32_1 = arith.constant 0 : i32
    return %arg0, %c0_i32, %c0_i32_0 : i32, i32, i32
  }
  func.func @transform_2(%arg0: i32) -> (i32, i32, i32) {
    %c0_i32 = arith.constant 0 : i32
    %c0_i32_0 = arith.constant 0 : i32
    %c0_i32_1 = arith.constant 0 : i32
    return %arg0, %c0_i32, %c0_i32_0 : i32, i32, i32
  }
  func.func @transform_3(%arg0: i32) -> (i32, i32) {
    %c0_i32 = arith.constant 0 : i32
    %c0_i32_0 = arith.constant 0 : i32
    %c0_i32_1 = arith.constant 0 : i32
    return %c0_i32, %c0_i32_0 : i32, i32
  }
  func.func @transform_4(%arg0: i32) -> (i32, i32) {
    %c0_i32 = arith.constant 0 : i32
    %c0_i32_0 = arith.constant 0 : i32
    %c0_i32_1 = arith.constant 0 : i32
    return %c0_i32, %c0_i32_0 : i32, i32
  }
  func.func @transform_5(%arg0: i32) -> (i32, i32) {
    %c0_i32 = arith.constant 0 : i32
    %c0_i32_0 = arith.constant 0 : i32
    %c0_i32_1 = arith.constant 0 : i32
    return %c0_i32, %c0_i32_0 : i32, i32
  }
  func.func @transform_6(%arg0: i32) -> (i32, i32) {
    %c0_i32 = arith.constant 0 : i32
    %c0_i32_0 = arith.constant 0 : i32
    %c0_i32_1 = arith.constant 0 : i32
    return %c0_i32, %c0_i32_0 : i32, i32
  }
  func.func @transform_7(%arg0: i32) -> (i32, i32, i32) {
    %c0_i32 = arith.constant 0 : i32
    %c0_i32_0 = arith.constant 0 : i32
    %c0_i32_1 = arith.constant 0 : i32
    return %arg0, %c0_i32, %c0_i32_0 : i32, i32, i32
  }
  func.func @transform_8(%arg0: i32) -> (i32, i32, i32, i32) {
    %c0_i32 = arith.constant 0 : i32
    %c0_i32_0 = arith.constant 0 : i32
    %c0_i32_1 = arith.constant 0 : i32
    %c0_i32_2 = arith.constant 0 : i32
    return %arg0, %c0_i32, %c0_i32_0, %c0_i32_1 : i32, i32, i32, i32
  }
}

</mosaic_0001>

<bundles_post_ra>
// kernel: tpu_custom_call.1
= control target key start
LH: loop header
LB: loop body
LE: loop exit
PB: predicated region body
PF: predicated region fallthrough
CT: control target
= control target key end

     0   :  { %s3604_s0 = inlined_call_operand.hbm [shape: f32[2,8,32], index: 0, kind: input, shape index: {}]   ;;  %s3605_s1 = inlined_call_operand.hbm [shape: f32[2,8,32], index: 1, kind: input, shape index: {}]   ;;  %s3606_s2 = inlined_call_operand.hbm [shape: f32[2,8,32], index: 2, kind: input, shape index: {}]   ;;  %s3607_s3 = inlined_call_operand.hbm [shape: f32[32,32], index: 3, kind: input, shape index: {}]   ;;  %s3608_s4 = inlined_call_operand.hbm [shape: f32[32,32], index: 4, kind: input, shape index: {}]   ;;  %s3609_s5 = inlined_call_operand.hbm [shape: f32[32,32], index: 5, kind: input, shape index: {}]   ;;  %s3610_s6 = inlined_call_operand.hbm [shape: f32[32,32], index: 6, kind: input, shape index: {}]   ;;  %s3611_s7 = inlined_call_operand.hbm [shape: f32[2,8,32], index: 7, kind: output, shape index: {0}]   ;;  %s3612_s8 = inlined_call_operand.hbm [shape: f32[2,4,8,8], index: 8, kind: output, shape index: {1}]  }
   0x1   :  { %3637 = sst [smem:[#allocation28_spill]] %s3605_s1 }
   0x2   :  { %3638 = sst [smem:[#allocation29_spill]] %s3607_s3 }
   0x3   :  { %3639 = sst [smem:[#allocation30_spill]] %s3609_s5 }
   0x4   :  { %3640 = sst [smem:[#allocation31_spill]] %s3611_s7 }
   0x5   :  { %3641 = sst [smem:[#allocation32_spill]] %s3612_s8 }
   0x6   :  { %14 = vsyncpa [#allocation3], 0 }
   0x7   :  { %16 = vsyncpa [#allocation3 + $0x1], 0 }
   0x8   :  { %17 = vsyncpa [#allocation6], 0 }
   0x9   :  { %19 = vsyncpa [#allocation6 + $0x1], 0 }
   0xa   :  { %20 = vsyncpa [#allocation9], 0 }
   0xb   :  { %21 = vsyncpa [#allocation12], 0 }
   0xc   :  { %22 = vsyncpa [#allocation4], 0 }
   0xd   :  { %24 = vsyncpa [#allocation4 + $0x1], 0 }
   0xe   :  { %25 = vsyncpa [#allocation16], 0 }
   0xf   :  { %27 = vsyncpa [#allocation16 + $0x1], 0  ;;  %s3014_s27 = smov 0   ;;  %s3016_s28 = smov 0  }
  0x10   :  { %s3018_s29 = smov 0   ;;  %s3020_s30 = smov 0  }
  0x11 LB: > { %3642 = sst [smem:[#allocation23_spill]] %s2932_s27  ;;  %s2946_s9 = smov [#allocation8]   ;;  %s2944_s30 = sphi %s3020_s30, %s3682_s30   ;;  %s2940_s29 = sphi %s3018_s29, %s3686_s29   ;;  %s2936_s28 = sphi %s3016_s28, %s3685_s28   ;;  %s2932_s27 = sphi %s3014_s27, %s3684_s27  }
  0x12   : > { %3643 = sst [smem:[#allocation24_spill]] %s2944_s30  ;;  %s264_s10 = sshll.u32 %s2946_s9, 4  ;;  %s3040_s10 = int_to_ptr.vmem [resolvable:$true] %s264_s10 }
  0x13   : > { %s3035_s11 = sadd.s32 4294967295, %s2944_s30   ;;  %p2278_p0 = scmp.ge.s32.totalorder %s2944_s30, 1 }
  0x14   : > { %p3623_p1 = scmp.eq.s32.totalorder %s3035_s11, 0  ;;  %p252_p2 = scmp.lt.s32.totalorder %s2944_s30, 3 }
  0x15   : > { %s2947_s13 = smov [#allocation11]   ;;  %s3646_s3 = sld [smem:[#allocation29_spill]] }
  0x16   : > { %p3042_p3 = pnand %p2278_p0, %p252_p2  ;;  %s290_s14 = sshll.u32 %s2947_s13, 4  ;;  %s3055_s14 = int_to_ptr.vmem [resolvable:$true] %s290_s14 }
  0x18   : > { %s3644_s12 = scalar_select %p3042_p3, 1, 0 }
  0x19   : > { %p2526_p5 = pneg %p3042_p3 }
  0x1b   : > { %p3051_p6 = pnand %p2526_p5, %p3623_p1  ;;  %s2632_s18 = scalar_lea.hbm %s3646_s3, 512 }
  0x1c   : > { %p2633_p7 = scmp.ne.s32.totalorder %s3646_s3, %s2632_s18  ;;  %p2639_p11 = scmp.lt.u32.totalorder %s2632_s18, %s3646_s3 }
  0x1d   : > { %s3645_s15 = scalar_select %p3051_p6, 1, 0 }
  0x1e   : > { %p3065_p8 = pneg %p3051_p6 }
  0x20   : > { %s3647_s21 = scalar_select %p3065_p8, 1, 0 }
  0x21   : > { %p2635_p9 = pnand %p3065_p8, %p2633_p7 }
  0x23   : > { %p2636_p10 = pneg %p2635_p9 }
  0x25   : > { %p2641_p12 = pnand %p2639_p11, %p2636_p10 }
  0x27   : > { %2644 = shalt.err (!%p2641_p12)
}
  0x28   : > { %s2645_s24 = scalar_lea.vmem %s3040_s10, 512  ;;  %p2653_p5 = scmp.lt.s32.totalorder %s3040_s10, %s3040_s10 }
  0x29   : > { %p2646_p13 = scmp.ne.s32.totalorder %s3040_s10, %s2645_s24  ;;  %p2654_p4 = scmp.lt.s32.totalorder %s2645_s24, %s2645_s24 }
  0x2b   : > { %p2648_p0 = pnand %p2646_p13, %p3065_p8  ;;  %p2655_p7 = por %p2654_p4, %p2653_p5 }
  0x2d   : > { %p2649_p2 = pneg %p2648_p0 }
  0x2f   : > { %p2656_p9 = pnand %p2655_p7, %p2649_p2 }
  0x31   : > { %2659 = shalt.err (!%p2656_p9)
}
  0x32   : > { %s3614_s25 = smov 128   ;;  %s3617_s26 = smov 8  }
  0x33   : > { %2529 = dma.hbm_to_vmem [thread:$0]  (!%p3051_p6), %s3646_s3, 512, %s3040_s10, [#allocation9], %s3614_s25, %s3614_s25, %s3617_s26  }
  0x34   : > { %s3648_s5 = sld [smem:[#allocation30_spill]] }
  0x3a   : > { %s2660_s18 = scalar_lea.hbm %s3648_s5, 512 }
  0x3b   : > { %p2661_p4 = scmp.ne.s32.totalorder %s3648_s5, %s2660_s18  ;;  %p2667_p12 = scmp.lt.u32.totalorder %s2660_s18, %s3648_s5 }
  0x3d   : > { %p2663_p10 = pnand %p2661_p4, %p3065_p8 }
  0x3f   : > { %p2664_p11 = pneg %p2663_p10 }
  0x41   : > { %p2669_p13 = pnand %p2667_p12, %p2664_p11 }
  0x43   : > { %2672 = shalt.err (!%p2669_p13)
}
  0x44   : > { %s2673_s10 = scalar_lea.vmem %s3055_s14, 512  ;;  %p2681_p7 = scmp.lt.s32.totalorder %s3055_s14, %s3055_s14 }
  0x45   : > { %p2674_p0 = scmp.ne.s32.totalorder %s3055_s14, %s2673_s10  ;;  %p2682_p9 = scmp.lt.s32.totalorder %s2673_s10, %s2673_s10 }
  0x47   : > { %p2676_p2 = pnand %p2674_p0, %p3065_p8  ;;  %p2683_p4 = por %p2682_p9, %p2681_p7 }
  0x49   : > { %p2677_p5 = pneg %p2676_p2 }
  0x4b   : > { %p2684_p10 = pnand %p2683_p4, %p2677_p5 }
  0x4d   : > { %2687 = shalt.err (!%p2684_p10)
}
  0x4e   : > { %2535 = dma.hbm_to_vmem [thread:$0]  (!%p3051_p6), %s3648_s5, 512, %s3055_s14, [#allocation12], %s3614_s25, %s3614_s25, %s3617_s26  }
  0x4f   : > { %s2277_s13 = sadd.s32 4294967294, %s2944_s30   ;;  %s3117_s16 = sadd.s32 1, %s2944_s30  }
  0x50   : > { %3649 = sst [smem:[#allocation25_spill]] %s3117_s16  ;;  %s37_s17 = ssub.s32 %s2944_s30, %s3117_s16 }
  0x51   : > { %s40_s18 = sadd.s32 1, %s2940_s29  ;;  %p38_p11 = scmp.eq.s32.totalorder %s37_s17, 0 }
  0x52   : > { %p47_p12 = scmp.ne.s32.totalorder %s2940_s29, %s2936_s28  ;;  %p48_p13 = scmp.eq.s32.totalorder %s2944_s30, 0 }
  0x53   : > { %p53_p0 = scmp.ne.s32.totalorder %s2936_s28, %s2932_s27  ;;  %p213_p7 = scmp.eq.s32.totalorder %s3035_s11, 1 }
  0x54   : > { %s3128_s19 = scalar_select %p38_p11, %s2940_s29, %s40_s18  }
  0x55   : > { %p49_p2 = por %p48_p13, %p47_p12  ;;  %p3132_p5 = por %p3623_p1, %p53_p0 }
  0x56   : > { %3650 = sst [smem:[#allocation26_spill]] %s3128_s19  ;;  %p219_p9 = scmp.eq.s32.totalorder %s2277_s13, 1 }
  0x57   : > { %s3651_s20 = scalar_select %p3132_p5, 1, 0 }
  0x58   : > { %p2560_p4 = scmp.lt.s32.totalorder %s2944_s30, 2  ;;  %s3616_s14 = sand.u32 1, %s2940_s29  }
  0x59   : > { %p3139_p10 = por %p213_p7, %p47_p12  ;;  %p3143_p3 = por %p219_p9, %p53_p0 }
  0x5a   : > { %s3149_s10 = sshll.u32 %s3616_s14, 3  ;;  %s3152_s24 = sshll.u32 %s2944_s30, 7 }
  0x5b   : > { %s3652_s22 = scalar_select %p3139_p10, 1, 0 }
  0x5c   : > { %s3653_s23 = scalar_select %p3143_p3, 1, 0 }
  0x5d   : > { %p3154_p11 = pnand %p2560_p4, %p49_p2  ;;  %s335_s13 = sand.u32 1, %s2944_s30  }
  0x5e   : > { %3654 = sst [smem:[#allocation27_spill]] %s3653_s23  ;;  %s3656_s1 = sld [smem:[#allocation28_spill]] }
  0x5f   : > { %s3655_s9 = scalar_select %p3154_p11, 1, 0 }
  0x60   : > { %s339_s14 = scalar_lea.vmem [#allocation5], %s3149_s10  ;;  %s2950_s3 = smov [#allocation10]  }
  0x61   : > { %s346_s26 = sshll.u32 %s339_s14, 4  ;;  %s3168_s5 = sshll.u32 %s2950_s3, 4  ;;  %s3166_s26 = int_to_ptr.vmem [resolvable:$true] %s346_s26  ;;  %s278_s5 = int_to_ptr.vmem [resolvable:$true] %s3168_s5 }
  0x62   : > { %s3170_s19 = scalar_lea.sflag [#allocation6], %s335_s13  ;;  %p3176_p13 = pneg %p3154_p11 }
  0x64   : > { %s3163_s25 = scalar_lea.hbm %s3656_s1, %s3152_s24  ;;  %s2693_s30 = scalar_lea.hbm %s3656_s1, 256 }
  0x65   : > { %s2688_s16 = scalar_lea.hbm %s3163_s25, 128  ;;  %p2694_p7 = scmp.lt.u32.totalorder %s3163_s25, %s3656_s1 }
  0x66   : > { %p2689_p12 = scmp.ne.s32.totalorder %s3163_s25, %s2688_s16  ;;  %p2695_p9 = scmp.lt.u32.totalorder %s2693_s30, %s2688_s16 }
  0x67   : > { %s3657_s17 = scalar_select %p3176_p13, 1, 0 }
  0x68   : > { %p2691_p0 = pnand %p3176_p13, %p2689_p12  ;;  %p2696_p4 = por %p2695_p9, %p2694_p7 }
  0x69   : > { %p2697_p1 = scmp.lt.u32.totalorder %s2688_s16, %s3163_s25 }
  0x6a   : > { %p2692_p2 = pneg %p2691_p0 }
  0x6b   : > { %p2698_p3 = por %p2697_p1, %p2696_p4 }
  0x6d   : > { %p2699_p10 = pnand %p2698_p3, %p2692_p2 }
  0x6f   : > { %2702 = shalt.err (!%p2699_p10)
}
  0x70   : > { %s2703_s13 = scalar_lea.vmem %s3166_s26, 128  ;;  %s2951_s18 = smov [#allocation5]  }
  0x71   : > { %p2704_p12 = scmp.ne.s32.totalorder %s3166_s26, %s2703_s13  ;;  %s2708_s14 = sshll.u32 %s2951_s18, 4  ;;  %s2709_s14 = int_to_ptr.vmem [resolvable:$false] %s2708_s14 }
  0x72   : > { %s2710_s23 = scalar_lea.vmem %s2709_s14, 256  ;;  %p2711_p6 = scmp.lt.s32.totalorder %s3166_s26, %s2709_s14 }
  0x73   : > { %p2706_p0 = pnand %p2704_p12, %p3176_p13  ;;  %p2712_p8 = scmp.lt.s32.totalorder %s2710_s23, %s2703_s13 }
  0x75   : > { %p2707_p5 = pneg %p2706_p0  ;;  %p2713_p7 = por %p2712_p8, %p2711_p6 }
  0x77   : > { %p2714_p9 = pnand %p2713_p7, %p2707_p5 }
  0x79   : > { %2717 = shalt.err (!%p2714_p9)
}
  0x7a   : > { %2545 = dma.hbm_to_vmem [thread:$0]  (!%p3154_p11), %s3163_s25, 128, %s3166_s26, %s3170_s19  }
  0x7b   : > { %s2718_s3 = scalar_lea.hbm %s3608_s4, 512  ;;  %p3658_p3 = scmp.ne.s32.totalorder %s3647_s21, 0 }
  0x7c   : > { %p2719_p1 = scmp.ne.s32.totalorder %s3608_s4, %s2718_s3  ;;  %p2725_p5 = scmp.lt.u32.totalorder %s2718_s3, %s3608_s4 }
  0x7e   : > { %p2721_p6 = pnand %p2719_p1, %p3658_p3 }
  0x80   : > { %p2722_p8 = pneg %p2721_p6 }
  0x82   : > { %p2727_p10 = pnand %p2725_p5, %p2722_p8 }
  0x84   : > { %2730 = shalt.err (!%p2727_p10)
}
  0x85   : > { %s2731_s23 = scalar_lea.vmem %s278_s5, 512  ;;  %p2739_p0 = scmp.lt.s32.totalorder %s278_s5, %s278_s5 }
  0x86   : > { %p2732_p2 = scmp.ne.s32.totalorder %s278_s5, %s2731_s23  ;;  %p2740_p7 = scmp.lt.s32.totalorder %s2731_s23, %s2731_s23 }
  0x88   : > { %p2734_p4 = pnand %p2732_p2, %p3658_p3  ;;  %p2741_p9 = por %p2740_p7, %p2739_p0 }
  0x8a   : > { %p2735_p12 = pneg %p2734_p4 }
  0x8c   : > { %p2742_p11 = pnand %p2741_p9, %p2735_p12 }
  0x8e   : > { %2745 = shalt.err (!%p2742_p11)
}
  0x8f   : > { %p3659_p1 = scmp.ne.s32.totalorder %s3645_s15, 0  ;;  %s3660_s1 = smov 8  }
  0x90   : > { %s3661_s25 = smov 128   ;;  %s2952_s16 = smov [#allocation13]  }
  0x91   : > { %2532 = dma.hbm_to_vmem [thread:$0]  (!%p3659_p1), %s3608_s4, 512, %s278_s5, [#allocation9], %s3661_s25, %s3661_s25, %s3660_s1  }
  0x92   : > { %s303_s3 = sshll.u32 %s2952_s16, 4  ;;  %s2746_s14 = scalar_lea.hbm %s3610_s6, 512  ;;  %s304_s3 = int_to_ptr.vmem [resolvable:$true] %s303_s3 }
  0x93   : > { %p2747_p11 = scmp.ne.s32.totalorder %s3610_s6, %s2746_s14  ;;  %p2753_p5 = scmp.lt.u32.totalorder %s2746_s14, %s3610_s6 }
  0x95   : > { %p2749_p6 = pnand %p2747_p11, %p3658_p3 }
  0x97   : > { %p2750_p8 = pneg %p2749_p6 }
  0x99   : > { %p2755_p10 = pnand %p2753_p5, %p2750_p8 }
  0x9b   : > { %2758 = shalt.err (!%p2755_p10)
}
  0x9c   : > { %s2759_s5 = scalar_lea.vmem %s304_s3, 512  ;;  %p2767_p0 = scmp.lt.s32.totalorder %s304_s3, %s304_s3 }
  0x9d   : > { %p2760_p2 = scmp.ne.s32.totalorder %s304_s3, %s2759_s5  ;;  %p2768_p7 = scmp.lt.s32.totalorder %s2759_s5, %s2759_s5 }
  0x9f   : > { %p2762_p4 = pnand %p2760_p2, %p3658_p3  ;;  %p2769_p9 = por %p2768_p7, %p2767_p0 }
  0xa1   : > { %p2763_p12 = pneg %p2762_p4 }
  0xa3   : > { %p2770_p13 = pnand %p2769_p9, %p2763_p12 }
  0xa5   : > { %2773 = shalt.err (!%p2770_p13)
}
  0xa6   : > { %2538 = dma.hbm_to_vmem [thread:$0]  (!%p3659_p1), %s3610_s6, 512, %s304_s3, [#allocation12], %s3661_s25, %s3661_s25, %s3660_s1  }
  0xa7   : > { %s3247_s26 = scalar_lea.hbm %s3604_s0, %s3152_s24  ;;  %s321_s15 = scalar_lea.vmem [#allocation2], %s3149_s10 }
  0xa8   : > { %s328_s30 = sshll.u32 %s321_s15, 4  ;;  %s3662_s16 = sand.u32 1, %s2940_s29   ;;  %s329_s30 = int_to_ptr.vmem [resolvable:$true] %s328_s30 }
  0xa9   : > { %s318_s18 = scalar_lea.sflag [#allocation3], %s3662_s16  ;;  %s2774_s13 = scalar_lea.hbm %s3247_s26, 128 }
  0xaa   : > { %p2775_p13 = scmp.ne.s32.totalorder %s3247_s26, %s2774_s13  ;;  %p3663_p3 = scmp.ne.s32.totalorder %s3657_s17, 0 }
  0xab   : > { %s2779_s3 = scalar_lea.hbm %s3604_s0, 256  ;;  %p2780_p1 = scmp.lt.u32.totalorder %s3247_s26, %s3604_s0 }
  0xac   : > { %p2777_p11 = pnand %p2775_p13, %p3663_p3  ;;  %p2781_p8 = scmp.lt.u32.totalorder %s2779_s3, %s2774_s13 }
  0xad   : > { %p2783_p10 = scmp.lt.u32.totalorder %s2774_s13, %s3247_s26 }
  0xae   : > { %p2778_p6 = pneg %p2777_p11  ;;  %p2782_p5 = por %p2781_p8, %p2780_p1 }
  0xb0   : > { %p2784_p2 = por %p2783_p10, %p2782_p5 }
  0xb2   : > { %p2785_p4 = pnand %p2784_p2, %p2778_p6 }
  0xb4   : > { %2788 = shalt.err (!%p2785_p4)
}
  0xb5   : > { %s2789_s5 = scalar_lea.vmem %s329_s30, 128  ;;  %s2953_s7 = smov [#allocation2]  }
  0xb6   : > { %p2790_p12 = scmp.ne.s32.totalorder %s329_s30, %s2789_s5  ;;  %s2794_s8 = sshll.u32 %s2953_s7, 4  ;;  %s2795_s8 = int_to_ptr.vmem [resolvable:$false] %s2794_s8 }
  0xb7   : > { %s2796_s27 = scalar_lea.vmem %s2795_s8, 256  ;;  %p2797_p9 = scmp.lt.s32.totalorder %s329_s30, %s2795_s8 }
  0xb8   : > { %p2792_p0 = pnand %p2790_p12, %p3663_p3  ;;  %p2798_p13 = scmp.lt.s32.totalorder %s2796_s27, %s2789_s5 }
  0xba   : > { %p2793_p7 = pneg %p2792_p0  ;;  %p2799_p11 = por %p2798_p13, %p2797_p9 }
  0xbc   : > { %p2800_p1 = pnand %p2799_p11, %p2793_p7 }
  0xbe   : > { %2803 = shalt.err (!%p2800_p1)
}
  0xbf   : > { %p3664_p8 = scmp.ne.s32.totalorder %s3655_s9, 0  ;;  %s3273_s16 = scalar_lea.hbm %s3606_s2, %s3152_s24 }
  0xc0   : > { %s357_s13 = scalar_lea.vmem [#allocation7], %s3149_s10  ;;  %s2804_s25 = scalar_lea.hbm %s3273_s16, 128 }
  0xc1   : > { %2542 = dma.hbm_to_vmem [thread:$0]  (!%p3664_p8), %s3247_s26, 128, %s329_s30, %s318_s18  }
  0xc2   : > { %s364_s1 = sshll.u32 %s357_s13, 4  ;;  %p2805_p6 = scmp.ne.s32.totalorder %s3273_s16, %s2804_s25  ;;  %s365_s1 = int_to_ptr.vmem [resolvable:$true] %s364_s1 }
  0xc3   : > { %s2809_s26 = scalar_lea.hbm %s3606_s2, 256  ;;  %p2810_p2 = scmp.lt.u32.totalorder %s3273_s16, %s3606_s2 }
  0xc4   : > { %p2807_p5 = pnand %p2805_p6, %p3663_p3  ;;  %p2811_p4 = scmp.lt.u32.totalorder %s2809_s26, %s2804_s25 }
  0xc5   : > { %p2813_p0 = scmp.lt.u32.totalorder %s2804_s25, %s3273_s16 }
  0xc6   : > { %p2808_p10 = pneg %p2807_p5  ;;  %p2812_p12 = por %p2811_p4, %p2810_p2 }
  0xc8   : > { %p2814_p7 = por %p2813_p0, %p2812_p12 }
  0xca   : > { %p2815_p9 = pnand %p2814_p7, %p2808_p10 }
  0xcc   : > { %2818 = shalt.err (!%p2815_p9)
}
  0xcd   : > { %s2819_s10 = scalar_lea.vmem %s365_s1, 128  ;;  %s2954_s24 = smov [#allocation7]  }
  0xce   : > { %p2820_p13 = scmp.ne.s32.totalorder %s365_s1, %s2819_s10  ;;  %s2824_s23 = sshll.u32 %s2954_s24, 4  ;;  %s2825_s23 = int_to_ptr.vmem [resolvable:$false] %s2824_s23 }
  0xcf   : > { %s2826_s5 = scalar_lea.vmem %s2825_s23, 256  ;;  %p2827_p6 = scmp.lt.s32.totalorder %s365_s1, %s2825_s23 }
  0xd0   : > { %p2822_p11 = pnand %p2820_p13, %p3663_p3  ;;  %p2828_p5 = scmp.lt.s32.totalorder %s2826_s5, %s2819_s10 }
  0xd2   : > { %p2823_p1 = pneg %p2822_p11  ;;  %p2829_p8 = por %p2828_p5, %p2827_p6 }
  0xd4   : > { %p2830_p2 = pnand %p2829_p8, %p2823_p1 }
  0xd6   : > { %2833 = shalt.err (!%p2830_p2)
}
  0xd7   : > { %p3665_p4 = scmp.ne.s32.totalorder %s3655_s9, 0  ;;  %p3666_p10 = scmp.ne.s32.totalorder %s3644_s12, 0 }
  0xd8   : > { %s3297_s17 = sand.u32 (!%p3666_p10), 1, %s2936_s28   ;;  %p3667_p3 = scmp.ne.s32.totalorder (!%p3666_p10), %s3651_s20, 0 }
  0xd9   : > { %2548 = dma.hbm_to_vmem [thread:$0]  (!%p3665_p4), %s3273_s16, 128, %s365_s1, %s3170_s19  }
  0xda   : > { %373 = sbr.rel (%p3666_p10) target bundleno = 1766 (0x6e6), region = 48  ;;  %s3300_s7 = sshll.u32 (!%p3666_p10), %s3297_s17, 3 }
  0xdb   : > { %s376_s8 = scalar_lea.sflag (!%p3666_p10), [#allocation3], %s3297_s17  ;;  %s379_s27 = scalar_lea.vmem (!%p3666_p10), [#allocation2], %s3300_s7 }
  0xe1   : > { %2907 = dma.done.wait (%p3667_p3), %s376_s8, 128  }
  0xe2   : > { %2909 = vsyncadd (%p3667_p3), %s376_s8, 4294967168  ;;  %s384_s12 = sand.u32 1, %s3035_s11   ;;  %s388_s9 = scalar_lea.vmem [#allocation5], %s3300_s7 }
  0xe3   : > { %s385_s19 = scalar_lea.sflag [#allocation6], %s384_s12 }
  0xe4   : > { %2911 = dma.done.wait (%p3667_p3), %s385_s19, 256  }
  0xe5   : > { %2913 = vsyncadd (%p3667_p3), %s385_s19, 4294967040  ;;  %s397_s21 = scalar_lea.vmem [#allocation7], %s3300_s7  ;;  %p3668_p8 = scmp.eq.s32.totalorder %s3035_s11, 0 }
  0xe7   : > { %2915 = dma.done.wait (%p3668_p8), [#allocation9], 1024   ;;  %p3669_p12 = pmov %p3668_p8 }
  0xe8   : > { %p3670_p0 = pmov %p3668_p8 }
  0xe9   : > { %2917 = vsyncadd (%p3669_p12), [#allocation9], 4294966272 }
  0xea   : > { %2919 = dma.done.wait (%p3670_p0), [#allocation12], 1024   ;;  %p3671_p7 = pmov %p3670_p0 }
  0xeb   : > { %v2955_v0 = vmov 0.0|0.0   ;;  %vm2956_vm0 = vmmov 0   ;;  %v2957_v1 = vmov 0.0   ;;  %vm468_vm1 = vcmask 261120   ;;  %v554_v3 = vld [vmem:[#allocation10] sm:$0xff]  ;;  %v555_v4 = vld [vmem:[#allocation10 + $0x8] sm:$0xff] }
  0xec   : > { %2921 = vsyncadd (%p3671_p7), [#allocation12], 4294966272  ;;  %2476 = vmatprep.subr.bf16.mxu1 %v2955_v0  ;;  %2468 = vmatprep.subr.bf16.mxu0 %v2955_v0  ;;  %v464_v5 = vld [vmem:[#allocation8] sm:$0xff]  ;;  %v2477_v6 = vpack.c.bf16 %v555_v4, %v554_v3  ;;  %v465_v7 = vld [vmem:[#allocation8 + $0x8] sm:$0xff]  ;;  %s2958_s20 = smov 104   ;;  %s2959_s15 = smov 120   ;;  %v748_v31 = vlaneseq }
  0xed   : > { %2403 = vmatprep.mubr.msk.f32.mxu1 %vm2956_vm0, %v2957_v1  ;;  %2392 = vmatprep.mubr.msk.f32.mxu0 %vm2956_vm0, %v2957_v1  ;;  %vm3331_vm2 = vmpackc.low %vm468_vm1, %vm468_vm1  ;;  %v2469_v8 = vpack.c.bf16 %v465_v7, %v464_v5  ;;  %v556_v9 = vld [vmem:[#allocation10 + $0x10] sm:$0xff]  ;;  %v557_v10 = vld [vmem:[#allocation10 + $0x18] sm:$0xff]  ;;  %s2960_s16 = smov 112   ;;  %v2961_v29 = vmov 1983009808   ;;  %vm1171_vm3 = vcmask 64512  }
  0xee   : > { %2479 = vmatpush3.bf16.xpose.msk.msra.mxu1 %vm3331_vm2, %v2477_v6  ;;  %v466_v11 = vld [vmem:[#allocation8 + $0x10] sm:$0xff]  ;;  %v467_v12 = vld [vmem:[#allocation8 + $0x18] sm:$0xff]  ;;  %v2481_v13 = vpack.c.bf16 %v557_v10, %v556_v9  ;;  %v462_v15 = vld [vmem:[%s388_s9] sm:$0xff]  ;;  %v746_v30 = vunpack.c.l.s4 %v2961_v29  ;;  %v2962_v32 = vmov 1934713408   ;;  %v749_v35 = vshrl.u32 %v748_v31, 7 }
  0xef   : > { %2471 = vmatpush3.bf16.xpose.msk.msra.mxu0 %vm3331_vm2, %v2469_v8  ;;  %2480 = vmatprep.subr.bf16.mxu1 %v2955_v0  ;;  %v2473_v14 = vpack.c.bf16 %v467_v12, %v466_v11  ;;  %v461_v16 = vld [vmem:[%s379_s27] sm:$0xff]  ;;  %v643_v22 = vld [vmem:[#allocation11] sm:$0xff]  ;;  %v644_v23 = vld [vmem:[#allocation11 + $0x8] sm:$0xff]  ;;  %v778_v33 = vunpack.c.l.s4 %v2962_v32  ;;  %s2299_s13 = sshll.u32 %s3297_s17, 5  ;;  %s2963_s25 = smov 16   ;;  %vm1965_vm4 = vcmask 130048  }
  0xf0   : > { %2472 = vmatprep.subr.bf16.mxu0 %v2955_v0  ;;  %v2485_v24 = vpack.c.bf16 %v644_v23, %v643_v22  ;;  %v645_v25 = vld [vmem:[#allocation11 + $0x10] sm:$0xff]  ;;  %v646_v26 = vld [vmem:[#allocation11 + $0x18] sm:$0xff]  ;;  %v747_v34 = vunpack.c.0.s8 %v746_v30  ;;  %s3459_s1 = scalar_lea.vmem [#allocation15], %s2299_s13  ;;  %s2964_s3 = smov 8   ;;  %vm1967_vm5 = vcmask 195584  }
  0xf1   : > { %v2489_v27 = vpack.c.bf16 %v646_v26, %v645_v25  ;;  %v463_v28 = vld [vmem:[%s397_s21] sm:$0xff]  ;;  %v779_v38 = vunpack.c.0.s8 %v778_v33  ;;  %s2965_s14 = smov 24   ;;  %s2347_s26 = sshll.u32 %s3035_s11, 9 }
  0xf2   : > { %v3374_v39 = vsub.s32 %v747_v34, %v749_v35  ;;  %s2091_s30 = sshll.u32 %s3459_s1, 4  ;;  %s3674_s24 = sld [smem:[#allocation32_spill]]  ;;  %s3527_s30 = int_to_ptr.vmem [resolvable:$true] %s2091_s30 }
  0xf3   : > { %v3376_v46 = vsub.s32 %v779_v38, %v749_v35  ;;  %s2065_s5 = scalar_lea.sflag [#allocation16], %s3297_s17  ;;  %s2834_s8 = scalar_lea.vmem %s3527_s30, 512 }
  0xf4   : > { %p2835_p9 = scmp.ne.s32.totalorder %s3527_s30, %s2834_s8  ;;  %p3675_p13 = scmp.ne.s32.totalorder %s3652_s22, 0 }
  0xf5   : > { %s2966_s27 = smov [#allocation15]  }
  0xf6   : > { %2483 = vmatpush3.bf16.xpose.msk.msra.mxu1 %vm3331_vm2, %v2481_v13  ;;  %p2836_p11 = pnand %p2835_p9, %p3675_p13  ;;  %s2838_s12 = sshll.u32 %s2966_s27, 4  ;;  %s2839_s12 = int_to_ptr.vmem [resolvable:$false] %s2838_s12 }
  0xf7   : > { %2475 = vmatpush3.bf16.xpose.msk.msra.mxu0 %vm3331_vm2, %v2473_v14  ;;  %2417 = vmatprep.subr.mxu1 %v2957_v1  ;;  %s2840_s19 = scalar_lea.vmem %s2839_s12, 1024  ;;  %p2841_p6 = scmp.lt.s32.totalorder %s3527_s30, %s2839_s12 }
  0xf8   : > { %2484 = vmatprep.subr.bf16.mxu0 %v2955_v0  ;;  %s3525_s23 = scalar_lea.hbm %s3674_s24, %s2347_s26  ;;  %p2837_p1 = pneg %p2836_p11 }
  0xf9   : > { %p2842_p5 = scmp.lt.s32.totalorder %s2840_s19, %s2834_s8 }
  0xfb   : > { %p2843_p2 = por %p2842_p5, %p2841_p6 }
  0xfd   : > { %2404 = vmatmul.mubr.msk.f32.vlgmr.msra.gmra.mrb[0].mxu1 %vm468_vm1, %v462_v15  ;;  %p2844_p4 = pnand %p2843_p2, %p2837_p1 }
  0xfe   : > { %2393 = vmatmul.mubr.msk.f32.vlgmr.msra.gmra.mrb[0].mxu0 %vm468_vm1, %v461_v16  ;;  %2419 = vmatprep.mubr.msk.f32.mxu1 %vm2956_vm0, %v2957_v1 }
  0xff   : > { %2414 = vmatprep.mubr.msk.f32.mxu0 %vm2956_vm0, %v2957_v1  ;;  %2487 = vmatpush3.bf16.xpose.msk.msra.mxu0 %vm3331_vm2, %v2485_v24 }
 0x100   : > { %2488 = vmatprep.subr.bf16.mxu0 %v2955_v0 }
 0x107   : > { %2491 = vmatpush3.bf16.xpose.msk.msra.mxu0 %vm3331_vm2, %v2489_v27 }
 0x108   : > { %2492 = vmatprep.subr.bf16.mxu0 %v2955_v0 }
 0x10e   : > { %2415 = vmatmul.mubr.msk.f32.vlgmr.msra.gmra.mrb[2].mxu0 %vm468_vm1, %v463_v28 }
 0x10f   : > { %2465 = vmatprep.mubr.msk.f32.mxu0 %vm2956_vm0, %v2957_v1 }
 0x1d0   : > { %v639_v17 = vpop.f32.mrb[0].mxu1 }
 0x1d1   : > { %886 = vrot.lane.b32.xlu1 %v639_v17, %s2958_s20  ;;  %880 = vrot.lane.b32.xlu0 %v639_v17, %s2959_s15  ;;  %v550_v18 = vpop.f32.mrb[0].mxu0  ;;  %v2405_v19 = vpop.f32.mrb[1].mxu1 }
 0x1d2   : > { %v732_v20 = vmul.f32 0.35355338, %v550_v18  ;;  %v2394_v21 = vpop.f32.mrb[1].mxu0 }
 0x1d5   : > { %883 = vrot.lane.b32.xlu0 %v639_v17, %s2960_s16  ;;  %734 = vrot.lane.b32.xlu1 %v732_v20, %s2959_s15 }
 0x1d9   : > { %737 = vrot.lane.b32.xlu0 %v732_v20, %s2960_s16  ;;  %740 = vrot.lane.b32.xlu1 %v732_v20, %s2958_s20 }
 0x243   : > { %v887_v36 = vpop.permute.xlu1 %886  ;;  %v881_v37 = vpop.permute.xlu0 %880 }
 0x244   : > { %v905_v40 = vcombine.low %v881_v37, %v887_v36  ;;  %v906_v41 = vcombine.high %v881_v37, %v887_v36 }
 0x246   : > { %v913_v47 = vrot.slane %v905_v40, %v3374_v39  ;;  %v920_v48 = vrot.slane %v906_v41, %v3374_v39 }
 0x247   : > { %v884_v42 = vpop.permute.xlu0 %883  ;;  %v735_v43 = vpop.permute.xlu1 %734 }
 0x248   : > { %v889_v44 = vcombine.low %v639_v17, %v884_v42  ;;  %v890_v45 = vcombine.high %v639_v17, %v884_v42 }
 0x24a   : > { %v897_v49 = vrot.slane %v889_v44, %v3374_v39  ;;  %v904_v50 = vrot.slane %v890_v45, %v3374_v39 }
 0x24b   : > { %v738_v51 = vpop.permute.xlu0 %737  ;;  %v741_v52 = vpop.permute.xlu1 %740 }
 0x24c   : > { %v921_v53 = vcombine.low %v897_v49, %v913_v47  ;;  %v922_v54 = vcombine.high %v897_v49, %v913_v47  ;;  %v937_v55 = vcombine.low %v904_v50, %v920_v48  ;;  %v938_v56 = vcombine.high %v904_v50, %v920_v48 }
 0x24d   : > { %v743_v57 = vcombine.low %v732_v20, %v738_v51  ;;  %v744_v58 = vcombine.high %v732_v20, %v738_v51  ;;  %v759_v59 = vcombine.low %v735_v43, %v741_v52  ;;  %v760_v60 = vcombine.high %v735_v43, %v741_v52 }
 0x24e   : > { %v929_v61 = vrot.slane %v921_v53, %v3376_v46  ;;  %v936_v62 = vrot.slane %v922_v54, %v3376_v46  ;;  %v945_v63 = vrot.slane %v937_v55, %v3376_v46  ;;  %v952_v3 = vrot.slane %v938_v56, %v3376_v46 }
 0x24f   : > { %v751_v4 = vrot.slane %v743_v57, %v3374_v39  ;;  %v758_v5 = vrot.slane %v744_v58, %v3374_v39  ;;  %v767_v6 = vrot.slane %v759_v59, %v3374_v39  ;;  %v774_v7 = vrot.slane %v760_v60, %v3374_v39  ;;  %v3430_v58 = vpop.f32.mrb[2].mxu0 }
 0x250   : > { %v957_v8 = vcombine.low %v929_v61, %v936_v62  ;;  %v2317_v9 = vcombine.high %v929_v61, %v936_v62  ;;  %v973_v10 = vcombine.low %v945_v63, %v952_v3  ;;  %v2318_v11 = vcombine.high %v945_v63, %v952_v3  ;;  %v2416_v59 = vpop.f32.mrb[3].mxu0 }
 0x251   : > { %v775_v12 = vcombine.low %v751_v4, %v767_v6  ;;  %v776_v13 = vcombine.high %v751_v4, %v767_v6  ;;  %v791_v14 = vcombine.low %v758_v5, %v774_v7  ;;  %v792_v15 = vcombine.high %v758_v5, %v774_v7 }
 0x252   : > { %v964_v16 = vrot.slane %v957_v8, %v3374_v39  ;;  %v972_v17 = vrot.slane %v2317_v9, %v3374_v39  ;;  %v980_v18 = vrot.slane %v973_v10, %v3374_v39  ;;  %v988_v19 = vrot.slane %v2318_v11, %v3374_v39 }
 0x253   : > { %v783_v20 = vrot.slane %v775_v12, %v3376_v46  ;;  %v790_v21 = vrot.slane %v776_v13, %v3376_v46  ;;  %v799_v22 = vrot.slane %v791_v14, %v3376_v46  ;;  %v806_v23 = vrot.slane %v792_v15, %v3376_v46 }
 0x254   : > { %v989_v24 = vcombine.low %v964_v16, %v972_v17  ;;  %v1005_v25 = vcombine.low %v980_v18, %v988_v19  ;;  %v990_v40 = vcombine.high %v964_v16, %v972_v17  ;;  %v1006_v41 = vcombine.high %v980_v18, %v988_v19 }
 0x255   : > { %v811_v26 = vcombine.low %v783_v20, %v790_v21  ;;  %v2315_v27 = vcombine.high %v783_v20, %v790_v21  ;;  %v827_v28 = vcombine.low %v799_v22, %v806_v23  ;;  %v2316_v29 = vcombine.high %v799_v22, %v806_v23 }
 0x256   : > { %v997_v30 = vrot.slane %v989_v24, %v3376_v46  ;;  %v1013_v31 = vrot.slane %v1005_v25, %v3376_v46  ;;  %v1004_v49 = vrot.slane %v990_v40, %v3376_v46  ;;  %v1020_v50 = vrot.slane %v1006_v41, %v3376_v46 }
 0x257   : > { %v818_v32 = vrot.slane %v811_v26, %v3374_v39  ;;  %v826_v33 = vrot.slane %v2315_v27, %v3374_v39  ;;  %v834_v34 = vrot.slane %v827_v28, %v3374_v39  ;;  %v842_v35 = vrot.slane %v2316_v29, %v3374_v39 }
 0x258   : > { %v1021_v36 = vcombine.low %v997_v30, %v1013_v31  ;;  %v1022_v48 = vcombine.high %v997_v30, %v1013_v31  ;;  %v1023_v54 = vcombine.low %v1004_v49, %v1020_v50  ;;  %v1024_v56 = vcombine.high %v1004_v49, %v1020_v50 }
 0x259   : > { %v843_v37 = vcombine.low %v818_v32, %v826_v33  ;;  %v859_v38 = vcombine.low %v834_v34, %v842_v35  ;;  %v844_v44 = vcombine.high %v818_v32, %v826_v33  ;;  %v860_v45 = vcombine.high %v834_v34, %v842_v35 }
 0x25a   : > { %2418 = vmatpush3.xpose.msk.msra.mxu1 %vm1171_vm3, %v1021_v36 }
 0x25b   : > { %2422 = vmatprep.subr.mxu1 %v2957_v1  ;;  %v851_v42 = vrot.slane %v843_v37, %v3376_v46  ;;  %v867_v43 = vrot.slane %v859_v38, %v3376_v46  ;;  %v858_v52 = vrot.slane %v844_v44, %v3376_v46  ;;  %v874_v53 = vrot.slane %v860_v45, %v3376_v46 }
 0x25d   : > { %v875_v47 = vcombine.low %v851_v42, %v867_v43  ;;  %v876_v51 = vcombine.high %v851_v42, %v867_v43  ;;  %v877_v55 = vcombine.low %v858_v52, %v874_v53  ;;  %v878_v57 = vcombine.high %v858_v52, %v874_v53 }
 0x25f   : > { %2420 = vmatmul.mubr.msk.f32.vlgmr.msra.gmra.mrb[2].mxu1 %vm1171_vm3, %v875_v47 }
 0x260   : > { %2423 = vmatpush3.xpose.msk.msra.mxu1 %vm1171_vm3, %v1022_v48  ;;  %2424 = vmatprep.mubr.msk.f32.mxu1 %vm2956_vm0, %v2957_v1 }
 0x261   : > { %2427 = vmatprep.subr.mxu1 %v2957_v1 }
 0x263   : > { %2425 = vmatmul.mubr.msk.f32.vlgmr.msra.gmra.mrb[4].mxu1 %vm1171_vm3, %v876_v51 }
 0x264   : > { %2428 = vmatpush3.xpose.msk.msra.mxu1 %vm1171_vm3, %v1023_v54  ;;  %2429 = vmatprep.mubr.msk.f32.mxu1 %vm2956_vm0, %v2957_v1 }
 0x265   : > { %2432 = vmatprep.subr.mxu1 %v2957_v1 }
 0x267   : > { %2430 = vmatmul.mubr.msk.f32.vlgmr.msra.gmra.mrb[6].mxu1 %vm1171_vm3, %v877_v55 }
 0x268   : > { %2433 = vmatpush3.xpose.msk.msra.mxu1 %vm1171_vm3, %v1024_v56  ;;  %2434 = vmatprep.mubr.msk.f32.mxu1 %vm2956_vm0, %v2957_v1 }
 0x269   : > { %2437 = vmatprep.subr.mxu1 %v2957_v1 }
 0x26b   : > { %2435 = vmatmul.mubr.msk.f32.vlgmr.msra.gmra.mrb[8].mxu1 %vm1171_vm3, %v878_v57 }
 0x26c   : > { %2439 = vmatprep.mubr.msk.f32.mxu1 %vm2956_vm0, %v2957_v1 }
 0x332   : > { %v1244_v60 = vpop.f32.mrb[2].mxu1 }
 0x333   : > { %v2421_v61 = vpop.f32.mrb[3].mxu1  ;;  %v1476_v62 = vsel %vm1171_vm3, %v1244_v60, -inf }
 0x334   : > { %1477 = vmax.xlane.f32.xlu0 %v1476_v62 }
 0x336   : > { %v1320_v63 = vpop.f32.mrb[4].mxu1 }
 0x337   : > { %v2426_v3 = vpop.f32.mrb[5].mxu1  ;;  %v1479_v4 = vsel %vm1171_vm3, %v1320_v63, -inf }
 0x338   : > { %1480 = vmax.xlane.f32.xlu1 %v1479_v4 }
 0x33a   : > { %v1396_v5 = vpop.f32.mrb[6].mxu1 }
 0x33b   : > { %v2431_v6 = vpop.f32.mrb[7].mxu1  ;;  %v1482_v7 = vsel %vm1171_vm3, %v1396_v5, -inf }
 0x33c   : > { %1483 = vmax.xlane.f32.xlu0 %v1482_v7 }
 0x33e   : > { %v1472_v8 = vpop.f32.mrb[8].mxu1 }
 0x33f   : > { %v2436_v9 = vpop.f32.mrb[9].mxu1  ;;  %v1485_v10 = vsel %vm1171_vm3, %v1472_v8, -inf }
 0x340   : > { %1486 = vmax.xlane.f32.xlu0 %v1485_v10 }
 0x349   : > { %1026 = vrot.lane.b32.xlu1 %v3430_v58, %s2959_s15 }
 0x3c1   : > { %v1478_v11 = vpop.xlane.xlu0 %1477 }
 0x3c2   : > { %v1488_v12 = vsub.f32 %v1244_v60, %v1478_v11 }
 0x3c4   : > { %v1492_v13 = vmul.f32 1.442695, %v1488_v12 }
 0x3c5   : > { %v1481_v14 = vpop.xlane.xlu1 %1480 }
 0x3c6   : > { %2616 = vpow2.f32 %v1492_v13  ;;  %v1489_v15 = vsub.f32 %v1320_v63, %v1481_v14 }
 0x3c8   : > { %v1494_v16 = vmul.f32 1.442695, %v1489_v15 }
 0x3c9   : > { %v1484_v21 = vpop.xlane.xlu0 %1483  ;;  %v1027_v31 = vpop.permute.xlu1 %1026 }
 0x3ca   : > { %2618 = vpow2.f32 %v1494_v16  ;;  %v1490_v22 = vsub.f32 %v1396_v5, %v1484_v21 }
 0x3cc   : > { %v1496_v24 = vmul.f32 1.442695, %v1490_v22 }
 0x3cd   : > { %v1487_v23 = vpop.xlane.xlu0 %1486 }
 0x3ce   : > { %v1491_v25 = vsub.f32 %v1472_v8, %v1487_v23  ;;  %2620 = vpow2.f32 %v1496_v24  ;;  %v1969_v23 = vld [vmem:[#allocation13] sm:$0xff]  ;;  %v1970_v24 = vld [vmem:[#allocation13 + $0x8] sm:$0xff] }
 0x3d0   : > { %v2617_v17 = vpop.eup %2616  ;;  %v1498_v26 = vmul.f32 1.442695, %v1491_v25  ;;  %v2493_v25 = vpack.c.bf16 %v1970_v24, %v1969_v23 }
 0x3d1   : > { %v1500_v18 = vsel %vm1171_vm3, %v2617_v17, 0.0 }
 0x3d2   : > { %1501 = vadd.xlane.f32.xlu1 %v1500_v18  ;;  %2622 = vpow2.f32 %v1498_v26  ;;  %2495 = vmatpush3.bf16.xpose.msk.msra.mxu0 %vm3331_vm2, %v2493_v25  ;;  %v1971_v26 = vld [vmem:[#allocation13 + $0x10] sm:$0xff] }
 0x3d3   : > { %2496 = vmatprep.subr.bf16.mxu0 %v2955_v0 }
 0x3d4   : > { %v2619_v19 = vpop.eup %2618 }
 0x3d5   : > { %v1503_v20 = vsel %vm1171_vm3, %v2619_v19, 0.0 }
 0x3d6   : > { %1504 = vadd.xlane.f32.xlu0 %v1503_v20 }
 0x3d8   : > { %v3444_v27 = vpop.eup %2620 }
 0x3d9   : > { %v1506_v28 = vsel %vm1171_vm3, %v3444_v27, 0.0 }
 0x3dc   : > { %v3448_v29 = vpop.eup %2622 }
 0x3dd   : > { %v1509_v30 = vsel %vm1171_vm3, %v3448_v29, 0.0 }
 0x3e3   : > { %1032 = vrot.lane.b32.xlu1 %v3430_v58, %s2958_s20 }
 0x3ec   : > { %1029 = vrot.lane.b32.xlu0 %v3430_v58, %s2960_s16 }
 0x407   : > { %1507 = vadd.xlane.f32.xlu1 %v1506_v28 }
 0x40b   : > { %1510 = vadd.xlane.f32.xlu0 %v1509_v30 }
 0x45f   : > { %v1502_v32 = vpop.xlane.xlu1 %1501 }
 0x460   : > { %2624 = vrcp.f32 %v1502_v32 }
 0x463   : > { %v1505_v33 = vpop.xlane.xlu0 %1504  ;;  %v1033_v34 = vpop.permute.xlu1 %1032 }
 0x464   : > { %2626 = vrcp.f32 %v1505_v33  ;;  %v1051_v35 = vcombine.low %v1027_v31, %v1033_v34  ;;  %v1052_v36 = vcombine.high %v1027_v31, %v1033_v34 }
 0x466   : > { %v1059_v42 = vrot.slane %v1051_v35, %v3374_v39  ;;  %v1066_v43 = vrot.slane %v1052_v36, %v3374_v39 }
 0x467   : > { %v1030_v37 = vpop.permute.xlu0 %1029 }
 0x468   : > { %v1035_v38 = vcombine.low %v3430_v58, %v1030_v37  ;;  %v1036_v40 = vcombine.high %v3430_v58, %v1030_v37 }
 0x46a   : > { %v2625_v41 = vpop.eup %2624  ;;  %v1043_v44 = vrot.slane %v1035_v38, %v3374_v39  ;;  %v1050_v45 = vrot.slane %v1036_v40, %v3374_v39 }
 0x46b   : > { %v1516_v47 = vmul.f32 %v2625_v41, %v2617_v17 }
 0x46c   : > { %v1067_v48 = vcombine.low %v1043_v44, %v1059_v42  ;;  %v1068_v49 = vcombine.high %v1043_v44, %v1059_v42  ;;  %v1083_v50 = vcombine.low %v1050_v45, %v1066_v43  ;;  %v1084_v51 = vcombine.high %v1050_v45, %v1066_v43 }
 0x46d   : > { %1520 = vst.msk [vmem:[%s3459_s1] sm:$0xff] %vm1171_vm3, %v1516_v47 }
 0x46e   : > { %v2627_v52 = vpop.eup %2626  ;;  %v1075_v53 = vrot.slane %v1067_v48, %v3376_v46  ;;  %v1082_v54 = vrot.slane %v1068_v49, %v3376_v46  ;;  %v1091_v55 = vrot.slane %v1083_v50, %v3376_v46  ;;  %v1098_v56 = vrot.slane %v1084_v51, %v3376_v46 }
 0x46f   : > { %v1517_v57 = vmul.f32 %v2627_v52, %v2619_v19 }
 0x470   : > { %v1103_v58 = vcombine.low %v1075_v53, %v1082_v54  ;;  %v2319_v59 = vcombine.high %v1075_v53, %v1082_v54  ;;  %v1119_v60 = vcombine.low %v1091_v55, %v1098_v56  ;;  %v2320_v61 = vcombine.high %v1091_v55, %v1098_v56 }
 0x471   : > { %1521 = vst.msk [vmem:[%s3459_s1 + $0x8] sm:$0xff] %vm1171_vm3, %v1517_v57 }
 0x472   : > { %v1110_v62 = vrot.slane %v1103_v58, %v3374_v39  ;;  %v1118_v63 = vrot.slane %v2319_v59, %v3374_v39  ;;  %v1126_v3 = vrot.slane %v1119_v60, %v3374_v39  ;;  %v1134_v4 = vrot.slane %v2320_v61, %v3374_v39 }
 0x474   : > { %v1135_v5 = vcombine.low %v1110_v62, %v1118_v63  ;;  %v1151_v6 = vcombine.low %v1126_v3, %v1134_v4  ;;  %v1136_v9 = vcombine.high %v1110_v62, %v1118_v63  ;;  %v1152_v10 = vcombine.high %v1126_v3, %v1134_v4 }
 0x476   : > { %v1143_v7 = vrot.slane %v1135_v5, %v3376_v46  ;;  %v1159_v8 = vrot.slane %v1151_v6, %v3376_v46  ;;  %v1150_v13 = vrot.slane %v1136_v9, %v3376_v46  ;;  %v1166_v14 = vrot.slane %v1152_v10, %v3376_v46 }
 0x478   : > { %v1167_v11 = vcombine.low %v1143_v7, %v1159_v8  ;;  %v1168_v12 = vcombine.high %v1143_v7, %v1159_v8  ;;  %v1169_v15 = vcombine.low %v1150_v13, %v1166_v14  ;;  %v1170_v20 = vcombine.high %v1150_v13, %v1166_v14 }
 0x47a   : > { %2438 = vmatpush3.msra.mxu1 %v1167_v11 }
 0x47b   : > { %2440 = vmatmul.mubr.msk.f32.vlgmr.msra.gmra.mrb[10].mxu1 %vm1171_vm3, %v1516_v47  ;;  %2442 = vmatprep.subr.mxu1 %v2957_v1 }
 0x47c   : > { %2443 = vmatpush3.msra.mxu1 %v1168_v12  ;;  %2444 = vmatprep.mubr.msk.f32.mxu1 %vm2956_vm0, %v2957_v1 }
 0x47d   : > { %2447 = vmatprep.subr.mxu1 %v2957_v1 }
 0x47f   : > { %2445 = vmatmul.mubr.msk.f32.vlgmr.msra.gmra.mrb[12].mxu1 %vm1171_vm3, %v1517_v57 }
 0x480   : > { %2448 = vmatpush3.msra.mxu1 %v1169_v15  ;;  %2449 = vmatprep.mubr.msk.f32.mxu1 %vm2956_vm0, %v2957_v1 }
 0x481   : > { %2452 = vmatprep.subr.mxu1 %v2957_v1 }
 0x494   : > { %v1508_v16 = vpop.xlane.xlu1 %1507 }
 0x495   : > { %2628 = vrcp.f32 %v1508_v16 }
 0x498   : > { %v1511_v17 = vpop.xlane.xlu0 %1510 }
 0x499   : > { %2630 = vrcp.f32 %v1511_v17 }
 0x49f   : > { %v2629_v18 = vpop.eup %2628 }
 0x4a0   : > { %v1518_v19 = vmul.f32 %v2629_v18, %v3444_v27  ;;  %v1972_v27 = vld [vmem:[#allocation13 + $0x18] sm:$0xff] }
 0x4a1   : > { %v2497_v28 = vpack.c.bf16 %v1972_v27, %v1971_v26 }
 0x4a2   : > { %1522 = vst.msk [vmem:[%s3459_s1 + $0x10] sm:$0xff] %vm1171_vm3, %v1518_v19  ;;  %2450 = vmatmul.mubr.msk.f32.vlgmr.msra.gmra.mrb[14].mxu1 %vm1171_vm3, %v1518_v19 }
 0x4a3   : > { %v2631_v21 = vpop.eup %2630  ;;  %2453 = vmatpush3.msra.mxu1 %v1170_v20  ;;  %2454 = vmatprep.mubr.msk.f32.mxu1 %vm2956_vm0, %v2957_v1 }
 0x4a4   : > { %v1519_v22 = vmul.f32 %v2631_v21, %v3448_v29  ;;  %2499 = vmatpush3.bf16.xpose.msk.msra.mxu0 %vm3331_vm2, %v2497_v28 }
 0x4a6   : > { %1523 = vst.msk [vmem:[%s3459_s1 + $0x18] sm:$0xff] %vm1171_vm3, %v1519_v22  ;;  %2455 = vmatmul.mubr.msk.f32.vlgmr.msra.gmra.mrb[16].mxu1 %vm1171_vm3, %v1519_v22 }
 0x54e   : > { %v1593_v1 = vpop.f32.mrb[10].mxu1 }
 0x54f   : > { %v2441_v29 = vpop.f32.mrb[11].mxu1 }
 0x552   : > { %v1666_v30 = vpop.f32.mrb[12].mxu1 }
 0x553   : > { %v2446_v31 = vpop.f32.mrb[13].mxu1 }
 0x575   : > { %v1739_v32 = vpop.f32.mrb[14].mxu1 }
 0x576   : > { %v1816_v33 = vcombine.low %v1593_v1, %v1739_v32  ;;  %v1817_v34 = vcombine.high %v1593_v1, %v1739_v32  ;;  %v2451_v35 = vpop.f32.mrb[15].mxu1 }
 0x578   : > { %v1824_v0 = vrot.slane %v1816_v33, %v3374_v39  ;;  %v1831_v41 = vrot.slane %v1817_v34, %v3374_v39 }
 0x579   : > { %v1812_v36 = vpop.f32.mrb[16].mxu1 }
 0x57a   : > { %v1832_v37 = vcombine.low %v1666_v30, %v1812_v36  ;;  %v1833_v38 = vcombine.high %v1666_v30, %v1812_v36  ;;  %v2456_v40 = vpop.f32.mrb[17].mxu1 }
 0x57c   : > { %v1840_v42 = vrot.slane %v1832_v37, %v3374_v39  ;;  %v1847_v2 = vrot.slane %v1833_v38, %v3374_v39 }
 0x57e   : > { %v1848_v43 = vcombine.low %v1824_v0, %v1840_v42  ;;  %v1849_v44 = vcombine.high %v1824_v0, %v1840_v42  ;;  %v1864_v45 = vcombine.low %v1831_v41, %v1847_v2  ;;  %v1865_v47 = vcombine.high %v1831_v41, %v1847_v2 }
 0x580   : > { %v1856_v48 = vrot.slane %v1848_v43, %v3376_v46  ;;  %v1863_v49 = vrot.slane %v1849_v44, %v3376_v46  ;;  %v1872_v50 = vrot.slane %v1864_v45, %v3376_v46  ;;  %v1879_v51 = vrot.slane %v1865_v47, %v3376_v46 }
 0x582   : > { %v1884_v52 = vcombine.low %v1856_v48, %v1863_v49  ;;  %v2333_v53 = vcombine.high %v1856_v48, %v1863_v49  ;;  %v1900_v54 = vcombine.low %v1872_v50, %v1879_v51  ;;  %v2334_v55 = vcombine.high %v1872_v50, %v1879_v51 }
 0x584   : > { %v1891_v56 = vrot.slane %v1884_v52, %v3374_v39  ;;  %v1899_v57 = vrot.slane %v2333_v53, %v3374_v39  ;;  %v1907_v58 = vrot.slane %v1900_v54, %v3374_v39  ;;  %v1915_v59 = vrot.slane %v2334_v55, %v3374_v39 }
 0x586   : > { %v1917_v60 = vcombine.high %v1891_v56, %v1899_v57  ;;  %v1933_v61 = vcombine.high %v1907_v58, %v1915_v59  ;;  %v1916_v62 = vcombine.low %v1891_v56, %v1899_v57  ;;  %v1932_v63 = vcombine.low %v1907_v58, %v1915_v59 }
 0x588   : > { %v1931_v3 = vrot.slane %v1917_v60, %v3376_v46  ;;  %v1947_v4 = vrot.slane %v1933_v61, %v3376_v46  ;;  %v1924_v5 = vrot.slane %v1916_v62, %v3376_v46  ;;  %v1940_v6 = vrot.slane %v1932_v63, %v3376_v46 }
 0x58a   : > { %v1950_v7 = vcombine.low %v1931_v3, %v1947_v4  ;;  %v1949_v8 = vcombine.high %v1924_v5, %v1940_v6  ;;  %v1951_v9 = vcombine.high %v1931_v3, %v1947_v4  ;;  %v1948_v10 = vcombine.low %v1924_v5, %v1940_v6 }
 0x58c   : > { %1957 = vrot.lane.b32.xlu1 %v1950_v7, %s2963_s25  ;;  %1953 = vrot.lane.b32.xlu0 %v1949_v8, %s2964_s3 }
 0x590   : > { %1961 = vrot.lane.b32.xlu1 %v1951_v9, %s2965_s14 }
 0x5fe   : > { %v1958_v39 = vpop.permute.xlu1 %1957  ;;  %v1954_v11 = vpop.permute.xlu0 %1953 }
 0x5ff   : > { %v1964_v12 = vsel %vm1171_vm3, %v1948_v10, %v1954_v11 }
 0x600   : > { %v1966_v13 = vsel %vm1965_vm4, %v1964_v12, %v1958_v39 }
 0x602   : > { %v1962_v46 = vpop.permute.xlu1 %1961 }
 0x603   : > { %v1968_v14 = vsel %vm1967_vm5, %v1966_v13, %v1962_v46 }
 0x604   : > { %2466 = vmatmul.mubr.msk.f32.vlgmr.msra.gmra.mrb[4].mxu0 %vm468_vm1, %v1968_v14 }
 0x605   : > { %2847 = shalt.err (!%p2844_p4)
}
 0x606   : > { %s2848_s9 = scalar_lea.hbm %s3525_s23, 512  ;;  %s2852_s15 = scalar_lea.hbm %s3674_s24, 1024 }
 0x607   : > { %p2849_p10 = scmp.ne.s32.totalorder %s3525_s23, %s2848_s9  ;;  %p2853_p12 = scmp.lt.u32.totalorder %s3525_s23, %s3674_s24 }
 0x608   : > { %p2854_p0 = scmp.lt.u32.totalorder %s2852_s15, %s2848_s9  ;;  %p2856_p9 = scmp.lt.u32.totalorder %s2848_s9, %s3525_s23 }
 0x609   : > { %p2850_p3 = pnand %p2849_p10, %p3675_p13 }
 0x60a   : > { %p2855_p7 = por %p2854_p0, %p2853_p12 }
 0x60b   : > { %p2851_p8 = pneg %p2850_p3 }
 0x60c   : > { %p2857_p11 = por %p2856_p9, %p2855_p7 }
 0x60e   : > { %p2858_p1 = pnand %p2857_p11, %p2851_p8 }
 0x610   : > { %2861 = shalt.err (!%p2858_p1)
}
 0x611   : > { %s2967_s1 = smov 128   ;;  %s2342_s25 = sshll.u32 %s3035_s11, 7 }
 0x612   : > { %2523 = dma.vmem_to_hbm [thread:$0]  (%p3675_p13), %s3527_s30, 512, %s3525_s23, %s2065_s5, %s2967_s1, %s2967_s1, %s2964_s3  }
 0x613   : > { %s453_s14 = scalar_lea.vmem [#allocation14], %s3300_s7  ;;  %s3676_s8 = sld [smem:[#allocation31_spill]] }
 0x614   : > { %s2078_s26 = sshll.u32 %s453_s14, 4  ;;  %s2060_s12 = scalar_lea.sflag [#allocation4], %s3297_s17  ;;  %s3561_s26 = int_to_ptr.vmem [resolvable:$true] %s2078_s26 }
 0x615   : > { %s2862_s19 = scalar_lea.vmem %s3561_s26, 128  ;;  %s2968_s11 = smov [#allocation14]  }
 0x616   : > { %p2863_p6 = scmp.ne.s32.totalorder %s3561_s26, %s2862_s19  ;;  %s2866_s7 = sshll.u32 %s2968_s11, 4  ;;  %s2867_s7 = int_to_ptr.vmem [resolvable:$false] %s2866_s7 }
 0x617   : > { %s2868_s3 = scalar_lea.vmem %s2867_s7, 256  ;;  %p2869_p4 = scmp.lt.s32.totalorder %s3561_s26, %s2867_s7 }
 0x618   : > { %p2864_p5 = pnand %p2863_p6, %p3675_p13  ;;  %p2870_p10 = scmp.lt.s32.totalorder %s2868_s3, %s2862_s19 }
 0x619   : > { %s3559_s27 = scalar_lea.hbm %s3676_s8, %s2342_s25 }
 0x61a   : > { %p2865_p2 = pneg %p2864_p5  ;;  %p2871_p3 = por %p2870_p10, %p2869_p4 }
 0x61c   : > { %p2872_p8 = pnand %p2871_p3, %p2865_p2 }
 0x6d7   : > { %v2054_v15 = vpop.f32.mrb[4].mxu0 }
 0x6d8   : > { %2058 = vst.msk [vmem:[%s453_s14] sm:$0xff] %vm468_vm1, %v2054_v15  ;;  %v2467_v16 = vpop.f32.mrb[5].mxu0 }
 0x6d9   : > { %2875 = shalt.err (!%p2872_p8)
}
 0x6da   : > { %s2876_s17 = scalar_lea.hbm %s3559_s27, 128  ;;  %s2880_s5 = scalar_lea.hbm %s3676_s8, 256 }
 0x6db   : > { %p2877_p12 = scmp.ne.s32.totalorder %s3559_s27, %s2876_s17  ;;  %p2881_p9 = scmp.lt.u32.totalorder %s3559_s27, %s3676_s8 }
 0x6dc   : > { %p2882_p11 = scmp.lt.u32.totalorder %s2880_s5, %s2876_s17  ;;  %p2884_p6 = scmp.lt.u32.totalorder %s2876_s17, %s3559_s27 }
 0x6dd   : > { %p2878_p0 = pnand %p2877_p12, %p3675_p13 }
 0x6de   : > { %p2883_p1 = por %p2882_p11, %p2881_p9 }
 0x6df   : > { %p2879_p7 = pneg %p2878_p0 }
 0x6e0   : > { %p2885_p5 = por %p2884_p6, %p2883_p1 }
 0x6e2   : > { %p2886_p2 = pnand %p2885_p5, %p2879_p7 }
 0x6e4   : > { %2889 = shalt.err (!%p2886_p2)
}
 0x6e5   : > { %2522 = dma.vmem_to_hbm [thread:$0]  (%p3675_p13), %s3561_s26, 128, %s3559_s27, %s2060_s12  }
 0x6e6 PF: > { %s3677_s20 = sld [smem:[#allocation23_spill]]  ;;  %s3678_s15 = sld [smem:[#allocation27_spill]] }
 0x6e7   : > { %s3679_s16 = sld [smem:[#allocation24_spill]] }
 0x6ec   : > { %s2106_s13 = sand.u32 1, %s3677_s20   ;;  %p3680_p4 = scmp.ne.s32.totalorder %s3678_s15, 0 }
 0x6ed   : > { %p3681_p10 = scmp.ge.s32.totalorder %s3679_s16, 2  ;;  %s2107_s1 = scalar_lea.sflag [#allocation4], %s2106_s13 }
 0x6ef   : > { %p2550_p3 = pnand %p3681_p10, %p3680_p4 }
 0x6f1   : > { %2923 = dma.done.wait (!%p2550_p3), %s2107_s1, 128  }
 0x6f2   : > { %2925 = vsyncadd (!%p2550_p3), %s2107_s1, 4294967168  ;;  %s2116_s25 = scalar_lea.sflag [#allocation16], %s2106_s13 }
 0x6f3   : > { %2927 = dma.done.wait (!%p2550_p3), %s2116_s25, 512  }
 0x6f4   : > { %2929 = vsyncadd (!%p2550_p3), %s2116_s25, 4294966784  ;;  %s3682_s30 = sld [smem:[#allocation25_spill]]  ;;  %s3683_s22 = sld [smem:[#allocation26_spill]] }
 0x6f5   : > { %s3684_s27 = smov %s2936_s28  ;;  %s3685_s28 = smov %s2940_s29 }
 0x6fa   : > { %p30_p13 = scmp.ge.s32.totalorder %s3682_s30, 4   ;;  %s3686_s29 = smov %s3683_s22 }
 0x6fc   :  { %32 = sbr.rel (!%p30_p13) target bundleno = 17 (0x11), region = 150 }
 0x703   :  { %2121 = vsyncpa [#allocation3], 1 }
 0x704   :  { %2123 = vsyncpa [#allocation3 + $0x1], 1 }
 0x705   :  { %2124 = vsyncpa [#allocation6], 1 }
 0x706   :  { %2126 = vsyncpa [#allocation6 + $0x1], 1 }
 0x707   :  { %2127 = vsyncpa [#allocation9], 1 }
 0x708   :  { %2128 = vsyncpa [#allocation12], 1 }
 0x709   :  { %2129 = vsyncpa [#allocation4], 1 }
 0x70a   :  { %2131 = vsyncpa [#allocation4 + $0x1], 1 }
 0x70b   :  { %2132 = vsyncpa [#allocation16], 1 }
 0x70c   :  { %2134 = vsyncpa [#allocation16 + $0x1], 1 }

</bundles_post_ra>
